<compile_context>
chip_gen: v7x
topology: tpu7x:2x2x1
jax: 0.10.0
libtpu: 0.0.40
codegen_flags: <defaults>
</compile_context>

<pallas_src>
import jax
import jax.numpy as jnp
from jax.experimental import pallas as pl
from jax.experimental.pallas import tpu as pltpu


def _round_up(v, m):
    return (v + m - 1) // m * m


def _resident_spec(block_shape):
    """BlockSpec for an operand whose block never changes across grid steps.

    Single-buffered (pl.Buffered(1)) so the resident weight/bias does not get
    a useless second VMEM copy; falls back to a plain (double-buffered) spec
    on JAX versions without pipeline_mode support.
    """
    idx = lambda i: (0,) * len(block_shape)
    try:
        return pl.BlockSpec(block_shape, idx,
                            pipeline_mode=pl.Buffered(buffer_count=1))
    except Exception:  # older JAX without pipeline_mode / Buffered
        return pl.BlockSpec(block_shape, idx)


def _patch_embed_kernel(p_ref, w_ref, b_ref, o_ref):
    # (TM, K) bf16 @ (K, E) bf16 on the MXU, f32 accumulation, f32 bias add,
    # cast to the output dtype (bf16 by default) at the store.
    acc = jnp.dot(p_ref[...], w_ref[...], preferred_element_type=jnp.float32)
    o_ref[...] = (acc + b_ref[...]).astype(o_ref.dtype)


def patch_embed_forward(x, weight, bias, *, kernel_size, patch_size,
                        tile_m=1024, out_dtype=jnp.bfloat16,
                        return_tokens=False):
    """Conv3d(C, E, kernel=(k,p,p), stride=(k,p,p)) forward.

    x:      (B, C, T, H, W)   float32
    weight: (E, C, k, p, p)   float32   (PyTorch Conv3d layout)
    bias:   (E,)              float32
    returns (B, E, T//k, H//p, W//p)   (or (B, L, E) tokens if return_tokens;
            that path skips the output back-transpose and is the fast path).
    """
    B, C, T, H, W = x.shape
    E = weight.shape[0]
    k, p = kernel_size, patch_size
    Tp, Hp, Wp = T // k, H // p, W // p
    N = B * Tp * Hp * Wp
    K = C * k * p * p

    # --- glue: extract non-overlapping tubelet patches ---------------------
    # (B, C, T, H, W) -> (B, Tp, Hp, Wp, C, k, p, p) so the flattened
    # contraction axis is ordered (C, kt, kh, kw), matching
    # weight.reshape(E, K).  Cast to bf16 is fused into the transpose write.
    xr = x.reshape(B, C, Tp, k, Hp, p, Wp, p)
    xr = jnp.transpose(xr, (0, 2, 4, 6, 1, 3, 5, 7))
    patches = xr.reshape(N, K).astype(jnp.bfloat16)

    # Weight / bias in kernel layout (no padding anywhere — see header note).
    w_flat = weight.reshape(E, K).T.astype(jnp.bfloat16)            # (K, E)
    b_row = bias.astype(jnp.float32).reshape(1, E)                  # (1, E)

    # --- row tiling ---------------------------------------------------------
    # VMEM (bf16 out): 2*TM*K*2B in + 2*TM*E*2B out + K*E*2B resident weight
    # (single-buffered) — ~7 MiB at TM=1024, K=E=768; fits v5e/v6e (128 MiB)
    # and v7x (64 MiB) with a lot of headroom under the 48 MiB limit below.
    tile_m = max(8, _round_up(tile_m, 8))
    if N > tile_m:
        TM = tile_m
    elif N >= 16:
        # Split small-N calls into >= 2 row tiles so the "parallel" grid axis
        # can use both TensorCores on v7x (harmless on 1-TC v5e/v6e).
        TM = _round_up(pl.cdiv(N, 2), 8)
    else:
        TM = N                      # tiny call: one full-extent block
    grid_m = pl.cdiv(N, TM)

    out_itemsize = jnp.dtype(out_dtype).itemsize
    cost = pl.CostEstimate(
        flops=2 * N * K * E,
        transcendentals=0,
        bytes_accessed=(N * K * 2 + K * E * 2 + E * 4 + N * E * out_itemsize),
    )

    out = pl.pallas_call(
        _patch_embed_kernel,
        out_shape=jax.ShapeDtypeStruct((N, E), out_dtype),
        grid_spec=pl.GridSpec(
            grid=(grid_m,),
            in_specs=[
                pl.BlockSpec((TM, K), lambda i: (i, 0)),   # patch row tile
                _resident_spec((K, E)),                    # resident weight
                _resident_spec((1, E)),                    # resident bias
            ],
            out_specs=pl.BlockSpec((TM, E), lambda i: (i, 0)),
        ),
        compiler_params=pltpu.CompilerParams(
            dimension_semantics=("parallel",),
            # 48 MiB is safe on every generation (v7x physical = 64 MiB) and
            # leaves room for tile_m up to ~2048 on v5e/v6e if desired.
            vmem_limit_bytes=48 * 1024 * 1024,
            allow_input_fusion=[True, False, False],
        ),
        cost_estimate=cost,
    )(patches, w_flat, b_row)

    if return_tokens:
        # (B, L, E) token layout — free reshape, what VideoMamba uses next.
        return out.reshape(B, Tp * Hp * Wp, E)
    # PyTorch Conv3d output layout (B, E, T', H', W') — costs one extra
    # transpose round trip of the (now bf16) output.
    out = out.reshape(B, Tp, Hp, Wp, E)
    return jnp.transpose(out, (0, 4, 1, 2, 3))


if __name__ == "__main__":
    # Small, module-consistent shapes that also exercise the ragged last row
    # tile (N % TM != 0) and a non-128-multiple embed dim:
    #   img_size=24, patch_size=8, tubelet kernel_size=1, in_chans=4,
    #   embed_dim=32, T=2, B=2  ->  N = 2*2*3*3 = 36 patches, K = 256,
    #   default tiling gives TM=24, grid_m=2 (last tile has 12 valid rows).
    B, C, T, H, W = 2, 4, 2, 24, 24
    patch_size = 8
    kernel_size = 1
    embed_dim = 32

    key = jax.random.PRNGKey(0)
    kx, kw, kb = jax.random.split(key, 3)
    x = jax.random.normal(kx, (B, C, T, H, W), dtype=jnp.float32)
    # Deterministic "init" of Conv3d parameters (synthetic, not a checkpoint).
    weight = jax.random.normal(
        kw, (embed_dim, C, kernel_size, patch_size, patch_size),
        dtype=jnp.float32) * 0.02
    bias = jax.random.normal(kb, (embed_dim,), dtype=jnp.float32) * 0.02

    fwd = jax.jit(lambda a, w, b: patch_embed_forward(
        a, w, b, kernel_size=kernel_size, patch_size=patch_size))
    out = jax.block_until_ready(fwd(x, weight, bias))

    # Pure-JAX f32 reference (same strided-conv-as-matmul math).
    Tp, Hp, Wp = T // kernel_size, H // patch_size, W // patch_size
    xr = x.reshape(B, C, Tp, kernel_size, Hp, patch_size, Wp, patch_size)
    xr = jnp.transpose(xr, (0, 2, 4, 6, 1, 3, 5, 7)).reshape(
        B * Tp * Hp * Wp, C * kernel_size * patch_size * patch_size)
    ref = xr @ weight.reshape(embed_dim, -1).T + bias[None, :]
    ref = jnp.transpose(ref.reshape(B, Tp, Hp, Wp, embed_dim), (0, 4, 1, 2, 3))

    assert out.shape == (B, embed_dim, Tp, Hp, Wp)
    # bf16 MXU inputs + bf16 output vs f32 reference -> loose tolerance
    # (acceptable for patch embedding; documented, deliberate).
    assert jnp.allclose(out.astype(jnp.float32), ref, atol=3e-2, rtol=3e-2)
    print("KERNEL_OK")
</pallas_src>

<mosaic_0001>
module attributes {stable_mosaic.version = 11 : i64} {
  func.func @_patch_embed_kernel(%arg0: i32, %arg1: memref<24x256xbf16, #tpu.memory_space<vmem>>, %arg2: memref<256x32xbf16, #tpu.memory_space<vmem>>, %arg3: memref<1x32xf32, #tpu.memory_space<vmem>>, %arg4: memref<24x32xbf16, #tpu.memory_space<vmem>>) attributes {dimension_semantics = [#tpu.dimension_semantics<parallel>], iteration_bounds = array<i64: 2>, scalar_prefetch = 0 : i64, scratch_operands = 0 : i64, tpu.core_type = #tpu.core_type<tc>, window_params = [{transform_indices = @transform_0, window_bounds = array<i64: 24, 256>}, {pipeline_mode = #tpu.pipeline_mode<synchronous>, transform_indices = @transform_1, window_bounds = array<i64: 256, 32>}, {pipeline_mode = #tpu.pipeline_mode<synchronous>, transform_indices = @transform_2, window_bounds = array<i64: 1, 32>}, {transform_indices = @transform_3, window_bounds = array<i64: 24, 32>}]} {
    %c0 = arith.constant 0 : index
    %c0_0 = arith.constant 0 : index
    %0 = vector.load %arg1[%c0, %c0_0] : memref<24x256xbf16, #tpu.memory_space<vmem>>, vector<24x256xbf16>
    %c0_1 = arith.constant 0 : index
    %c0_2 = arith.constant 0 : index
    %1 = vector.load %arg2[%c0_1, %c0_2] : memref<256x32xbf16, #tpu.memory_space<vmem>>, vector<256x32xbf16>
    %cst = arith.constant dense<0.000000e+00> : vector<24x32xf32>
    %2 = tpu.matmul %0, %1, %cst {dimension_numbers = #tpu.dot_dimension_numbers<[1], [0], [0], [1], [0, 0, 1, 1], [], []>} : vector<24x256xbf16>, vector<256x32xbf16>, vector<24x32xf32> -> vector<24x32xf32>
    %c0_3 = arith.constant 0 : index
    %c0_4 = arith.constant 0 : index
    %3 = vector.load %arg3[%c0_3, %c0_4] : memref<1x32xf32, #tpu.memory_space<vmem>>, vector<1x32xf32>
    %4 = vector.broadcast %3 : vector<1x32xf32> to vector<24x32xf32>
    %5 = arith.addf %2, %4 : vector<24x32xf32>
    %6 = arith.truncf %5 : vector<24x32xf32> to vector<24x32xbf16>
    %c0_5 = arith.constant 0 : index
    %c0_6 = arith.constant 0 : index
    %7 = vector.load %arg4[%c0_5, %c0_6] : memref<24x32xbf16, #tpu.memory_space<vmem>>, vector<24x32xbf16>
    tpu.vector_store %arg4[%c0_5, %c0_6], %6 {strides = array<i32>} : memref<24x32xbf16, #tpu.memory_space<vmem>>, vector<24x32xbf16>,
    return
  }
  func.func @transform_0(%arg0: i32) -> (i32, i32) {
    %c0_i32 = arith.constant 0 : i32
    %c0_i32_0 = arith.constant 0 : i32
    return %arg0, %c0_i32 : i32, i32
  }
  func.func @transform_1(%arg0: i32) -> (i32, i32) {
    %c0_i32 = arith.constant 0 : i32
    %c0_i32_0 = arith.constant 0 : i32
    %c0_i32_1 = arith.constant 0 : i32
    return %c0_i32, %c0_i32_0 : i32, i32
  }
  func.func @transform_2(%arg0: i32) -> (i32, i32) {
    %c0_i32 = arith.constant 0 : i32
    %c0_i32_0 = arith.constant 0 : i32
    %c0_i32_1 = arith.constant 0 : i32
    return %c0_i32, %c0_i32_0 : i32, i32
  }
  func.func @transform_3(%arg0: i32) -> (i32, i32) {
    %c0_i32 = arith.constant 0 : i32
    %c0_i32_0 = arith.constant 0 : i32
    return %arg0, %c0_i32 : i32, i32
  }
}

</mosaic_0001>

<bundles_post_ra>
// kernel: _lambda_.1
= control target key start
LH: loop header
LB: loop body
LE: loop exit
PB: predicated region body
PF: predicated region fallthrough
CT: control target
= control target key end

     0   :  { %s959_s12 = smov 0   ;;  %s961_s13 = smov 0   ;;  %s1089_s0 = inlined_call_operand.vmem [shape: bf16[36,256], index: 0, kind: input, shape index: {}]   ;;  %s1090_s1 = inlined_call_operand.vmem [shape: bf16[256,32], index: 1, kind: input, shape index: {}]   ;;  %s1091_s2 = inlined_call_operand.vmem [shape: f32[1,32], index: 2, kind: input, shape index: {}]   ;;  %s1092_s3 = inlined_call_operand.vmem [shape: bf16[36,32], index: 3, kind: output, shape index: {}]  }
   0x1   :  { %s963_s14 = smov 0  }
   0x2 LB: > { %s972_s15 = sadd.s32 4294967295, %s905_s14   ;;  %s974_s16 = sadd.s32 1, %s905_s14   ;;  %s905_s14 = sphi %s963_s14, %s1096_s14   ;;  %s901_s13 = sphi %s961_s13, %s1095_s13   ;;  %s897_s12 = sphi %s959_s12, %s1094_s12  }
   0x3   : > { %s85_s17 = ssub.s32 %s905_s14, %s974_s16  ;;  %s88_s18 = sadd.s32 1, %s901_s13 }
   0x4   : > { %p86_p0 = scmp.eq.s32.totalorder %s85_s17, 0  ;;  %p98_p1 = scmp.ne.s32.totalorder %s901_s13, %s897_s12 }
   0x5   : > { %p99_p2 = scmp.eq.s32.totalorder %s972_s15, 1  ;;  %p648_p3 = scmp.ge.s32.totalorder %s905_s14, 1 }
   0x6   : > { %s982_s19 = scalar_select %p86_p0, %s901_s13, %s88_s18  }
   0x7   : > { %p984_p4 = por %p99_p2, %p98_p1  ;;  %p149_p5 = scmp.lt.s32.totalorder %s905_s14, 3 }
   0x9   : > { %p150_p6 = pnand %p648_p3, %p149_p5 }
   0xa   : > { %v826_v0 = vld [vmem:[%s1090_s1 + $0x40] sm:$0xff] (!%p150_p6)   ;;  %s992_s23 = smul.u32 (!%p150_p6), 3, %s972_s15  ;;  %v828_v2 = vld [vmem:[%s1090_s1 + $0x48] sm:$0xff] (!%p150_p6)   ;;  %v830_v4 = vld [vmem:[%s1090_s1 + $0x50] sm:$0xff] (!%p150_p6)   ;;  %vm417_vm0 = vcmask (!%p150_p6), 257024  }
   0xb   : > { %153 = sbr.rel (%p150_p6) target bundleno = 327 (0x147), region = 32  ;;  %v827_v1 = vld [vmem:[%s1090_s1] sm:$0xff] (!%p150_p6)   ;;  %692 = vmatprep.subr.bf16.mxu0 (!%p150_p6), %v826_v0  ;;  %720 = vmatprep.subr.bf16.mxu1 (!%p150_p6), %v826_v0  ;;  %v829_v3 = vld [vmem:[%s1090_s1 + $0x8] sm:$0xff] (!%p150_p6)   ;;  %v831_v5 = vld [vmem:[%s1090_s1 + $0x10] sm:$0xff] (!%p150_p6)  }
   0xc   : > { %693 = vmatpush3.bf16.msra.mxu0 (!%p150_p6), %v827_v1  ;;  %728 = vmatpush3.bf16.msra.mxu1 (!%p150_p6), %v827_v1  ;;  %p184_p7 = scmp.lt.s32.totalorder (!%p150_p6), %s992_s23, 4  ;;  %v832_v6 = vld [vmem:[%s1090_s1 + $0x58] sm:$0xff] (!%p150_p6)   ;;  %v834_v8 = vld [vmem:[%s1090_s1 + $0x60] sm:$0xff] (!%p150_p6)   ;;  %v836_v10 = vld [vmem:[%s1090_s1 + $0x68] sm:$0xff] (!%p150_p6)  }
   0xd   : > { %694 = vmatprep.subr.bf16.mxu0 (!%p150_p6), %v828_v2  ;;  %721 = vmatprep.subr.bf16.mxu1 (!%p150_p6), %v828_v2  ;;  %v833_v7 = vld [vmem:[%s1090_s1 + $0x18] sm:$0xff] (!%p150_p6)   ;;  %v835_v9 = vld [vmem:[%s1090_s1 + $0x20] sm:$0xff] (!%p150_p6)   ;;  %v837_v14 = vld [vmem:[%s1090_s1 + $0x28] sm:$0xff] (!%p150_p6)  }
   0xe   : > { %v838_v15 = vld [vmem:[%s1090_s1 + $0x70] sm:$0xff] (!%p150_p6)   ;;  %v840_v17 = vld [vmem:[%s1090_s1 + $0x78] sm:$0xff] (!%p150_p6)   ;;  %v651_v23 = vld [vmem:[%s1091_s2] ss:$0 sm:$0xff] (!%p150_p6) }
   0xf   : > { %v839_v16 = vld [vmem:[%s1090_s1 + $0x30] sm:$0xff] (!%p150_p6)   ;;  %v841_v18 = vld [vmem:[%s1090_s1 + $0x38] sm:$0xff] (!%p150_p6)  }
  0x10   : > { %695 = vmatpush3.bf16.msra.mxu0 (!%p150_p6), %v829_v3  ;;  %729 = vmatpush3.bf16.msra.mxu1 (!%p150_p6), %v829_v3 }
  0x11   : > { %696 = vmatprep.subr.bf16.mxu0 (!%p150_p6), %v830_v4  ;;  %722 = vmatprep.subr.bf16.mxu1 (!%p150_p6), %v830_v4 }
  0x12   : > { %s185_s7 = scalar_select %p184_p7, %s992_s23, 4 }
  0x13   : > { %s429_s22 = ssub.s32 (%p984_p4), 5, %s992_s23 }
  0x14   : > { %697 = vmatpush3.bf16.msra.mxu0 %v831_v5  ;;  %730 = vmatpush3.bf16.msra.mxu1 %v831_v5  ;;  %s687_s14 = sshll.u32 %s185_s7, 3  ;;  %p430_p8 = scmp.lt.s32.totalorder (%p984_p4), %s429_s22, 3 }
  0x15   : > { %698 = vmatprep.subr.bf16.mxu0 %v832_v6  ;;  %723 = vmatprep.subr.bf16.mxu1 %v832_v6  ;;  %s188_s24 = scalar_lea.vmem %s1089_s0, %s687_s14  ;;  %s175_s14 = sand.u32 1, %s897_s12  }
  0x16   : > { %v844_v11 = vld [vmem:[%s188_s24 + $0x4] ss:$8 sps:$4 sm:$0xff]   ;;  %v203_v12 = vld [vmem:[%s188_s24 + $0x10] sm:$0xff]  ;;  %v842_v19 = vld [vmem:[%s188_s24] ss:$8 sps:$4 sm:$0xff]   ;;  %s736_s17 = smul.u32 12, %s175_s14 }
  0x17   : > { %v655_v13 = vcombine.high %v203_v12, %v203_v12  ;;  %388 = vmatprep.mubr.bf16.mxu0 %v844_v11  ;;  %v654_v20 = vcombine.low %v203_v12, %v203_v12  ;;  %s691_s24 = smul.u32 (%p984_p4), 12, %s972_s15 }
  0x18   : > { %699 = vmatpush3.bf16.msra.mxu0 %v833_v7  ;;  %731 = vmatpush3.bf16.msra.mxu1 %v833_v7  ;;  %s1048_s12 = scalar_lea.vmem [#allocation2], %s736_s17  }
  0x19   : > { %700 = vmatprep.subr.bf16.mxu0 %v834_v8  ;;  %724 = vmatprep.subr.bf16.mxu1 %v834_v8  ;;  %s1060_s27 = scalar_lea.vmem (%p984_p4), %s1092_s3, %s691_s24  }
  0x1a   : > { %396 = vmatprep.mubr.bf16.mxu1 %v655_v13 }
  0x1c   : > { %701 = vmatpush3.bf16.msra.mxu0 %v835_v9  ;;  %732 = vmatpush3.bf16.msra.mxu1 %v835_v9 }
  0x1d   : > { %702 = vmatprep.subr.bf16.mxu0 %v836_v10  ;;  %725 = vmatprep.subr.bf16.mxu1 %v836_v10 }
  0x20   : > { %703 = vmatpush3.bf16.msra.mxu0 %v837_v14  ;;  %733 = vmatpush3.bf16.msra.mxu1 %v837_v14 }
  0x21   : > { %704 = vmatprep.subr.bf16.mxu0 %v838_v15  ;;  %726 = vmatprep.subr.bf16.mxu1 %v838_v15 }
  0x24   : > { %705 = vmatpush3.bf16.msra.mxu0 %v839_v16  ;;  %734 = vmatpush3.bf16.msra.mxu1 %v839_v16 }
  0x25   : > { %706 = vmatprep.subr.bf16.mxu0 %v840_v17  ;;  %727 = vmatprep.subr.bf16.mxu1 %v840_v17 }
  0x28   : > { %707 = vmatpush3.bf16.msra.mxu0 %v841_v18  ;;  %735 = vmatpush3.bf16.msra.mxu1 %v841_v18 }
  0x2b   : > { %389 = vmatmul.mubr.bf16.vlgmr.msra.gmra.mrb[0].mxu0 %v842_v19  ;;  %397 = vmatmul.mubr.bf16.vlgmr.msra.gmra.mrb[0].mxu1 %v654_v20 }
  0xfe   : > { %v708_v21 = vpop.f32.mrb[0].mxu0  ;;  %v714_v22 = vpop.f32.mrb[0].mxu1 }
  0xff   : > { %v709_v24 = vpop.f32.mrb[1].mxu0  ;;  %v715_v25 = vpop.f32.mrb[1].mxu1 }
 0x100   : > { %v710_v26 = vadd.f32 %v709_v24, %v708_v21  ;;  %v716_v27 = vadd.f32 %v715_v25, %v714_v22  ;;  %v711_v28 = vpop.f32.mrb[2].mxu0  ;;  %v717_v29 = vpop.f32.mrb[2].mxu1 }
 0x101   : > { %v712_v30 = vpop.f32.mrb[3].mxu0  ;;  %v718_v31 = vpop.f32.mrb[3].mxu1 }
 0x102   : > { %v391_v32 = vadd.f32 %v710_v26, %v651_v23  ;;  %v399_v33 = vadd.f32 %v716_v27, %v651_v23  ;;  %v713_v34 = vadd.f32 %v712_v30, %v711_v28  ;;  %427 = sbr.rel (!%p984_p4) target bundleno = 327 (0x147), region = 36 }
 0x104   : > { %v688_v35 = vpack.c.bf16 %v391_v32, %v391_v32  ;;  %v690_v36 = vpack.c.bf16 %v399_v33, %v399_v33  ;;  %v394_v37 = vadd.f32 %v713_v34, %v651_v23 }
 0x106   : > { %418 = vst.msk [vmem:[%s1048_s12] sm:$0xf] %vm417_vm0, %v688_v35  ;;  %420 = vst.msk [vmem:[%s1048_s12 + $0x8] sm:$0xf] %vm417_vm0, %v690_v36  ;;  %v689_v38 = vpack.c.bf16 %v394_v37, %v394_v37 }
 0x108   : > { %419 = vst.msk [vmem:[%s1048_s12 + $0x4] sm:$0xf] %vm417_vm0, %v689_v38 }
 0x109   : > { %s1098_s22 = smov (!%p430_p8, %s429_s22), 3 }
 0x10a   : > { %s675_s28 = sshll.u32 %s1098_s22, 6 }
 0x10b   : > { %p678_p9 = scmp.eq.s32.totalorder %s675_s28, 0 }
 0x10c   : > { %847 = sdivrem.u32 (!%p678_p9), %s1098_s22, 3 }
 0x10d   : > { %438 = sbr.rel (%p678_p9) target bundleno = 327 (0x147), region = 40 }
 0x115   : > { %s1066_s20 = spop.drf %847 }
 0x116   : > { %p679_p10 = scmp.le.s32.totalorder %s1066_s20, 0 }
 0x117   : > { %s907_s15 = smov (!%p679_p10), %s1060_s27   ;;  %s911_s23 = smov (!%p679_p10), %s1048_s12  }
 0x118   : > { %601 = sbr.rel (%p679_p10) target bundleno = 298 (0x12a), region = 112  ;;  %s915_s29 = smov (!%p679_p10), 0  }
 0x119   : > { %s919_s30 = smov (!%p679_p10), 0  }
 0x11f LB: >> { %v455_v39 = vld [vmem:[%s913_s23] sm:$0xf]  ;;  %v457_v40 = vld [vmem:[%s913_s23 + $0x4] sm:$0xf]  ;;  %v459_v41 = vld [vmem:[%s913_s23 + $0x8] sm:$0xf]  ;;  %s921_s30 = sphi %s919_s30, %s449_s30   ;;  %s917_s29 = sphi %s915_s29, %s916_s29   ;;  %s913_s23 = sphi %s911_s23, %s466_s23   ;;  %s909_s15 = sphi %s907_s15, %s467_s15  }
 0x120   : >> { %456 = vst [vmem:[%s909_s15] sm:$0xf] %v455_v39  ;;  %458 = vst [vmem:[%s909_s15 + $0x4] sm:$0xf] %v457_v40  ;;  %s461_s4 = sadd.s32 1, %s917_s29  ;;  %s449_s30 = sadd.s32 1, %s921_s30  }
 0x121   : >> { %460 = vst [vmem:[%s909_s15 + $0x8] sm:$0xf] %v459_v41  ;;  %p462_p11 = scmp.ge.s32.totalorder %s461_s4, %s1066_s20  ;;  %p448_p12 = scmp.ge.s32.totalorder %s449_s30, %s1066_s20 }
 0x123   : >> { %s1100_s4 = smov (%p462_p11, %s461_s4), 0  ;;  %451 = sbr.rel (!%p448_p12) target bundleno = 287 (0x11f), region = 118 }
 0x124   : >> { %s464_s5 = smul.u32 12, %s1100_s4  ;;  %s916_s29 = smov %s1100_s4  }
 0x126   : >> { %s466_s23 = scalar_lea.vmem %s1048_s12, %s464_s5 [#allocation2]   ;;  %s467_s15 = scalar_lea.vmem %s1060_s27, %s464_s5  }
 0x12a PF: > { %849 = sdivrem.u32 %s1098_s22, 3 }
 0x12b   : > { %s680_s6 = smul.u32 12, %s1066_s20 }
 0x12d   : > { %s472_s7 = scalar_lea.vmem %s1048_s12, %s680_s6 [#allocation2]   ;;  %s474_s8 = scalar_lea.vmem %s1060_s27, %s680_s6  }
 0x133   : > { %s850_s9 = spop.drf %849 }
 0x134   : > { %p682_p13 = scmp.le.s32.totalorder %s850_s9, 0 }
 0x135   : > { %s923_s10 = smov (!%p682_p13), %s474_s8   ;;  %s927_s11 = smov (!%p682_p13), %s472_s7  }
 0x136   : > { %615 = sbr.rel (%p682_p13) target bundleno = 327 (0x147), region = 123  ;;  %s931_s14 = smov (!%p682_p13), 0  }
 0x137   : > { %s935_s17 = smov (!%p682_p13), 0  }
 0x13d LB: >> { %v484_v42 = vld [vmem:[%s929_s11] sm:$0xf]  ;;  %s486_s18 = sadd.s32 1, %s933_s14  ;;  %s478_s17 = sadd.s32 1, %s937_s17   ;;  %s937_s17 = sphi %s935_s17, %s478_s17   ;;  %s933_s14 = sphi %s931_s14, %s932_s14   ;;  %s929_s11 = sphi %s927_s11, %s491_s11   ;;  %s925_s10 = sphi %s923_s10, %s492_s10  }
 0x13e   : >> { %485 = vst [vmem:[%s925_s10] sm:$0xf] %v484_v42  ;;  %p487_p0 = scmp.ge.s32.totalorder %s486_s18, %s850_s9  ;;  %p477_p1 = scmp.ge.s32.totalorder %s478_s17, %s850_s9 }
 0x140   : >> { %s1102_s18 = smov (%p487_p0, %s486_s18), 0  ;;  %480 = sbr.rel (!%p477_p1) target bundleno = 317 (0x13d), region = 129 }
 0x141   : >> { %s683_s21 = sshll.u32 %s1102_s18, 2  ;;  %s932_s14 = smov %s1102_s18  }
 0x142   : >> { %s491_s11 = scalar_lea.vmem %s472_s7, %s683_s21 [#allocation2]   ;;  %s492_s10 = scalar_lea.vmem %s474_s8, %s683_s21  }
 0x147 PF: > { %p10_p2 = scmp.ge.s32.totalorder %s974_s16, 4   ;;  %s1094_s12 = smov %s901_s13 }
 0x148   : > { %s1095_s13 = smov %s982_s19  ;;  %s1096_s14 = smov %s974_s16 }
 0x149   :  { %12 = sbr.rel (!%p10_p2) target bundleno = 2 (0x2), region = 140 }

</bundles_post_ra>
